<compile_context>
chip_gen: v7x
topology: tpu7x:2x2x1
jax: 0.10.0
libtpu: 0.0.40
codegen_flags: <defaults>
</compile_context>

<pallas_src>
import jax
import jax.numpy as jnp
from jax.experimental import pallas as pl
from jax.experimental.pallas import tpu as pltpu

EPS = 1e-5  # PyTorch BatchNorm1d default eps


def _batchnorm(y, inv_n, eps=EPS):
    # Training-mode BatchNorm1d(affine=False): per-channel mean / biased var
    # over (batch, time), single reduction pass (sum & sum-of-squares).
    s1 = jnp.sum(y, axis=(0, 2), keepdims=True)
    s2 = jnp.sum(y * y, axis=(0, 2), keepdims=True)
    mean = s1 * inv_n
    var = jnp.maximum(s2 * inv_n - mean * mean, 0.0)
    return (y - mean) * jax.lax.rsqrt(var + eps)


def eeg_simplenet_kernel(x_ref, w_sp_ref, w_bp_ref, w_lp_ref, w_out_ref, out_ref):
    # Shapes (all static from the BlockSpecs):
    #   x_ref     (B, Ceeg, T)       full input, identical block every step
    #   w_sp_ref  (Bt, Ceeg, 1)      spatial 1x1 conv weights, this branch tile
    #   w_bp_ref  (Bt, Kbp, 1)       depthwise band-pass taps
    #   w_lp_ref  (Bt, Klp, 1)       depthwise low-pass taps
    #   w_out_ref (Bt, T, 128)       linear weight slab (n_out padded to 128)
    #   out_ref   (1, B, 128)        per-branch-tile partial of the linear
    B, Ceeg, T = x_ref.shape
    Bt, Kbp, _ = w_bp_ref.shape
    Klp = w_lp_ref.shape[1]
    inv_n = 1.0 / (B * T)

    x = x_ref[...]

    # --- SpatialFilter: 1x1 conv as Ceeg broadcast FMAs (VPU; Ceeg tiny).
    # Bias omitted: cancelled exactly by the following affine-free training-mode
    # BatchNorm (mean subtraction).
    w_sp = w_sp_ref[...]                                  # (Bt, Ceeg, 1)
    y = x[:, 0:1, :] * w_sp[:, 0, :][None]                # (B, Bt, T)
    for c in range(1, Ceeg):
        y = y + x[:, c:c + 1, :] * w_sp[:, c, :][None]
    y = _batchnorm(y, inv_n)

    # --- Hoisted boundary masks, shared by both depthwise convs. One (1,1,T)
    # iota vreg; ONE compare per distinct tap offset (only one side can be OOB).
    t_idx = jax.lax.broadcasted_iota(jnp.int32, (1, 1, T), 2)
    p_bp, p_lp = (Kbp - 1) // 2, (Klp - 1) // 2
    offsets = set(range(-p_bp, Kbp - p_bp)) | set(range(-p_lp, Klp - p_lp))
    masks = {}
    for d in sorted(offsets):
        if d > 0:
            masks[d] = t_idx < (T - d)
        elif d < 0:
            masks[d] = t_idx >= (-d)

    def depthwise_same(v, w):
        # Depthwise Conv1d, padding='same', cross-correlation tap order:
        #   out[..., t] = sum_j v[..., t + j - P] * w[j], P=(K-1)//2, zeros OOB.
        # Each tap: one XLU lane rotation + one masked select + FMA.
        K = w.shape[1]
        P = (K - 1) // 2
        acc = None
        for j in range(K):
            d = j - P                                     # source offset
            if d == 0:
                tap = v
            else:
                rolled = pltpu.roll(v, shift=(-d) % T, axis=2)  # rolled[t]=v[(t+d)%T]
                tap = jnp.where(masks[d], rolled, 0.0)
            term = tap * w[:, j, :][None]
            acc = term if acc is None else acc + term
        return acc

    # --- Band-pass depthwise conv (bias=False) -> BN -> abs -----------------
    y = depthwise_same(y, w_bp_ref[...])
    y = jnp.abs(_batchnorm(y, inv_n))       # LeakyReLU(negative_slope=-1) == abs

    # --- Low-pass depthwise conv (bias cancelled by BN) -> BN -> ReLU -------
    z = depthwise_same(y, w_lp_ref[...])
    z = jnp.maximum(_batchnorm(z, inv_n), 0.0)

    # --- Per-branch linear partials: Bt MXU matmuls (B,T)x(T,128), register
    # accumulation; no flatten scratch, lane-dense N=128 output stores.
    acc = jnp.dot(z[:, 0, :], w_out_ref[0], preferred_element_type=jnp.float32)
    for r in range(1, Bt):
        acc = acc + jnp.dot(z[:, r, :], w_out_ref[r],
                            preferred_element_type=jnp.float32)
    out_ref[...] = acc[None, :, :]


def _pick_branch_tile(n_branches):
    # Prefer >=2 grid steps (megacore / pipelining) with a sublane-friendly tile.
    for bt in (8, 4, 2, 1):
        if n_branches % bt == 0 and n_branches // bt >= 2:
            return bt
    return n_branches


@jax.jit
def eeg_simplenet_forward(x, w_sp, b_sp, w_bp, w_lp, b_lp, w_lin, b_lin):
    """x: (B, Ceeg, T). Parameters in native PyTorch layouts:
       w_sp (Br, Ceeg, 1), b_sp (Br,), w_bp (Br, 1, Kbp), w_lp (Br, 1, Klp),
       b_lp (Br,), w_lin (n_out, Br*T), b_lin (n_out,)."""
    B, Ceeg, T = x.shape
    Br, _, Kbp = w_bp.shape
    Klp = w_lp.shape[-1]
    n_out = w_lin.shape[0]

    # b_sp / b_lp are mathematically dead here: each feeds an affine-free
    # training-mode BatchNorm that subtracts the per-channel mean.
    del b_sp, b_lp

    bt = _pick_branch_tile(Br)
    n_tiles = Br // bt
    n_out_pad = 128  # lane-dense MXU N-dim and output stores; sliced afterwards

    # Kernel-friendly layouts (XLA outside the kernel, essentially free):
    # branch axis leading so it can be gridded without (8,128) block constraints.
    w_sp_k = w_sp                                      # (Br, Ceeg, 1)
    w_bp_k = jnp.transpose(w_bp, (0, 2, 1))            # (Br, Kbp, 1)
    w_lp_k = jnp.transpose(w_lp, (0, 2, 1))            # (Br, Klp, 1)
    # Linear weight (n_out, Br*T) -> (Br, T, 128): flatten index = branch*T + t.
    w_lin_k = jnp.transpose(
        jnp.pad(w_lin.reshape(n_out, Br, T),
                ((0, n_out_pad - n_out), (0, 0), (0, 0))),
        (1, 2, 0))                                     # (Br, T, 128)

    partials = pl.pallas_call(
        eeg_simplenet_kernel,
        out_shape=jax.ShapeDtypeStruct((n_tiles, B, n_out_pad), jnp.float32),
        grid=(n_tiles,),
        in_specs=[
            pl.BlockSpec((B, Ceeg, T), lambda r: (0, 0, 0)),       # x (shared)
            pl.BlockSpec((bt, Ceeg, 1), lambda r: (r, 0, 0)),      # w_sp tile
            pl.BlockSpec((bt, Kbp, 1), lambda r: (r, 0, 0)),       # w_bp tile
            pl.BlockSpec((bt, Klp, 1), lambda r: (r, 0, 0)),       # w_lp tile
            pl.BlockSpec((bt, T, n_out_pad), lambda r: (r, 0, 0)), # w_lin tile
        ],
        out_specs=pl.BlockSpec((1, B, n_out_pad), lambda r: (r, 0, 0)),
        compiler_params=pltpu.CompilerParams(
            dimension_semantics=("parallel",),
            vmem_limit_bytes=32 * 1024 * 1024),
    )(x, w_sp_k, w_bp_k, w_lp_k, w_lin_k)

    # Sum per-branch-tile partials outside the kernel (keeps the grid axis
    # parallel), add the linear bias, drop the lane padding.
    return jnp.sum(partials, axis=0)[:, :n_out] + b_lin[None, :]


def _reference_forward(x, w_sp, b_sp, w_bp, w_lp, b_lp, w_lin, b_lin, eps=EPS):
    # Pure-JAX reference of the PyTorch forward (training-mode BN, biased var).
    hi = jax.lax.Precision.HIGHEST

    def bn(y):
        mean = jnp.mean(y, axis=(0, 2), keepdims=True)
        var = jnp.var(y, axis=(0, 2), keepdims=True)
        return (y - mean) / jnp.sqrt(var + eps)

    def dw_same(y, w):  # w: (Br, 1, K), cross-correlation, 'same' zero padding
        K = w.shape[-1]
        P = (K - 1) // 2
        ypad = jnp.pad(y, ((0, 0), (0, 0), (P, K - 1 - P)))
        out = jnp.zeros_like(y)
        for j in range(K):
            out = out + ypad[:, :, j:j + y.shape[2]] * w[None, :, 0, j:j + 1][0][None]
        return out

    y = jnp.einsum('bct,rc->brt', x, w_sp[:, :, 0], precision=hi) \
        + b_sp[None, :, None]
    y = bn(y)
    y = jnp.abs(bn(dw_same(y, w_bp)))
    z = dw_same(y, w_lp) + b_lp[None, :, None]
    z = jnp.maximum(bn(z), 0.0)
    flat = z.reshape(z.shape[0], -1)
    return jnp.dot(flat, w_lin.T, precision=hi) + b_lin[None, :]


if __name__ == "__main__":
    # Small, module-consistent shapes.
    B = 2          # batch
    Ceeg = 4       # n_eeg_channels
    Br = 8         # n_branches
    T = 128        # window_size (multiple of 128: lane-exact)
    Kbp = 7        # band_pass_length
    Klp = 5        # low_pass_length
    n_out = 3      # n_output

    key = jax.random.PRNGKey(0)
    ks = jax.random.split(key, 8)

    # Deterministic synthetic parameters, native PyTorch layouts.
    w_sp = 0.3 * jax.random.normal(ks[0], (Br, Ceeg, 1), jnp.float32)      # Conv1d k=1
    b_sp = 0.1 * jax.random.normal(ks[1], (Br,), jnp.float32)
    w_bp = 0.3 * jax.random.normal(ks[2], (Br, 1, Kbp), jnp.float32)       # depthwise
    w_lp = 0.3 * jax.random.normal(ks[3], (Br, 1, Klp), jnp.float32)       # depthwise
    b_lp = 0.1 * jax.random.normal(ks[4], (Br,), jnp.float32)
    w_lin = 0.05 * jax.random.normal(ks[5], (n_out, Br * T), jnp.float32)  # Linear
    b_lin = 0.1 * jax.random.normal(ks[6], (n_out,), jnp.float32)
    x = jax.random.normal(ks[7], (B, Ceeg, T), jnp.float32)

    out = eeg_simplenet_forward(x, w_sp, b_sp, w_bp, w_lp, b_lp, w_lin, b_lin)
    out = jax.block_until_ready(out)
    assert out.shape == (B, n_out)

    ref = _reference_forward(x, w_sp, b_sp, w_bp, w_lp, b_lp, w_lin, b_lin)
    err = float(jnp.max(jnp.abs(out - ref)))
    assert err < 1e-2, f"kernel/reference mismatch, max abs err = {err}"

    print("KERNEL_OK")
</pallas_src>

<mosaic_0001>
module attributes {stable_mosaic.version = 11 : i64} {
  func.func @eeg_simplenet_kernel(%arg0: i32, %arg1: memref<2x4x128xf32, #tpu.memory_space<vmem>>, %arg2: memref<4x4x1xf32, #tpu.memory_space<vmem>>, %arg3: memref<4x7x1xf32, #tpu.memory_space<vmem>>, %arg4: memref<4x5x1xf32, #tpu.memory_space<vmem>>, %arg5: memref<4x128x128xf32, #tpu.memory_space<vmem>>, %arg6: memref<1x2x128xf32, #tpu.memory_space<vmem>>) attributes {dimension_semantics = [#tpu.dimension_semantics<parallel>], iteration_bounds = array<i64: 2>, scalar_prefetch = 0 : i64, scratch_operands = 0 : i64, tpu.core_type = #tpu.core_type<tc>, window_params = [{pipeline_mode = #tpu.pipeline_mode<synchronous>, transform_indices = @transform_0, window_bounds = array<i64: 2, 4, 128>}, {transform_indices = @transform_1, window_bounds = array<i64: 4, 4, 1>}, {transform_indices = @transform_2, window_bounds = array<i64: 4, 7, 1>}, {transform_indices = @transform_3, window_bounds = array<i64: 4, 5, 1>}, {transform_indices = @transform_4, window_bounds = array<i64: 4, 128, 128>}, {transform_indices = @transform_5, window_bounds = array<i64: 1, 2, 128>}]} {
    %c0 = arith.constant 0 : index
    %c0_0 = arith.constant 0 : index
    %c0_1 = arith.constant 0 : index
    %0 = vector.load %arg1[%c0, %c0_0, %c0_1] : memref<2x4x128xf32, #tpu.memory_space<vmem>>, vector<2x4x128xf32>
    %c0_2 = arith.constant 0 : index
    %c0_3 = arith.constant 0 : index
    %c0_4 = arith.constant 0 : index
    %1 = vector.load %arg2[%c0_2, %c0_3, %c0_4] : memref<4x4x1xf32, #tpu.memory_space<vmem>>, vector<4x4x1xf32>
    %2 = vector.extract_strided_slice %0 {offsets = [0, 0, 0], sizes = [2, 1, 128], strides = [1, 1, 1]} : vector<2x4x128xf32> to vector<2x1x128xf32>
    %3 = vector.extract_strided_slice %1 {offsets = [0, 0, 0], sizes = [4, 1, 1], strides = [1, 1, 1]} : vector<4x4x1xf32> to vector<4x1x1xf32>
    %4 = vector.shape_cast %3 : vector<4x1x1xf32> to vector<4x1xf32>
    %5 = vector.shape_cast %4 : vector<4x1xf32> to vector<1x4x1xf32>
    %6 = vector.broadcast %2 : vector<2x1x128xf32> to vector<2x4x128xf32>
    %7 = vector.broadcast %5 : vector<1x4x1xf32> to vector<2x4x128xf32>
    %8 = arith.mulf %6, %7 : vector<2x4x128xf32>
    %9 = vector.extract_strided_slice %0 {offsets = [0, 1, 0], sizes = [2, 1, 128], strides = [1, 1, 1]} : vector<2x4x128xf32> to vector<2x1x128xf32>
    %10 = vector.extract_strided_slice %1 {offsets = [0, 1, 0], sizes = [4, 1, 1], strides = [1, 1, 1]} : vector<4x4x1xf32> to vector<4x1x1xf32>
    %11 = vector.shape_cast %10 : vector<4x1x1xf32> to vector<4x1xf32>
    %12 = vector.shape_cast %11 : vector<4x1xf32> to vector<1x4x1xf32>
    %13 = vector.broadcast %9 : vector<2x1x128xf32> to vector<2x4x128xf32>
    %14 = vector.broadcast %12 : vector<1x4x1xf32> to vector<2x4x128xf32>
    %15 = arith.mulf %13, %14 : vector<2x4x128xf32>
    %16 = arith.addf %8, %15 : vector<2x4x128xf32>
    %17 = vector.extract_strided_slice %0 {offsets = [0, 2, 0], sizes = [2, 1, 128], strides = [1, 1, 1]} : vector<2x4x128xf32> to vector<2x1x128xf32>
    %18 = vector.extract_strided_slice %1 {offsets = [0, 2, 0], sizes = [4, 1, 1], strides = [1, 1, 1]} : vector<4x4x1xf32> to vector<4x1x1xf32>
    %19 = vector.shape_cast %18 : vector<4x1x1xf32> to vector<4x1xf32>
    %20 = vector.shape_cast %19 : vector<4x1xf32> to vector<1x4x1xf32>
    %21 = vector.broadcast %17 : vector<2x1x128xf32> to vector<2x4x128xf32>
    %22 = vector.broadcast %20 : vector<1x4x1xf32> to vector<2x4x128xf32>
    %23 = arith.mulf %21, %22 : vector<2x4x128xf32>
    %24 = arith.addf %16, %23 : vector<2x4x128xf32>
    %25 = vector.extract_strided_slice %0 {offsets = [0, 3, 0], sizes = [2, 1, 128], strides = [1, 1, 1]} : vector<2x4x128xf32> to vector<2x1x128xf32>
    %26 = vector.extract_strided_slice %1 {offsets = [0, 3, 0], sizes = [4, 1, 1], strides = [1, 1, 1]} : vector<4x4x1xf32> to vector<4x1x1xf32>
    %27 = vector.shape_cast %26 : vector<4x1x1xf32> to vector<4x1xf32>
    %28 = vector.shape_cast %27 : vector<4x1xf32> to vector<1x4x1xf32>
    %29 = vector.broadcast %25 : vector<2x1x128xf32> to vector<2x4x128xf32>
    %30 = vector.broadcast %28 : vector<1x4x1xf32> to vector<2x4x128xf32>
    %31 = arith.mulf %29, %30 : vector<2x4x128xf32>
    %32 = arith.addf %24, %31 : vector<2x4x128xf32>
    %cst = arith.constant dense<0.000000e+00> : vector<4xf32>
    %33 = vector.multi_reduction <add>, %32, %cst [0, 2] : vector<2x4x128xf32> to vector<4xf32>
    %34 = vector.shape_cast %33 : vector<4xf32> to vector<1x4x1xf32>
    %35 = arith.mulf %32, %32 : vector<2x4x128xf32>
    %cst_5 = arith.constant dense<0.000000e+00> : vector<4xf32>
    %36 = vector.multi_reduction <add>, %35, %cst_5 [0, 2] : vector<2x4x128xf32> to vector<4xf32>
    %37 = vector.shape_cast %36 : vector<4xf32> to vector<1x4x1xf32>
    %cst_6 = arith.constant 3.906250e-03 : f32
    %38 = vector.broadcast %cst_6 : f32 to vector<1x4x1xf32>
    %39 = arith.mulf %34, %38 : vector<1x4x1xf32>
    %cst_7 = arith.constant 3.906250e-03 : f32
    %40 = vector.broadcast %cst_7 : f32 to vector<1x4x1xf32>
    %41 = arith.mulf %37, %40 : vector<1x4x1xf32>
    %42 = arith.mulf %39, %39 : vector<1x4x1xf32>
    %43 = arith.subf %41, %42 : vector<1x4x1xf32>
    %cst_8 = arith.constant 0.000000e+00 : f32
    %44 = vector.broadcast %cst_8 : f32 to vector<1x4x1xf32>
    %45 = arith.maximumf %43, %44 : vector<1x4x1xf32>
    %46 = vector.broadcast %39 : vector<1x4x1xf32> to vector<2x4x128xf32>
    %47 = arith.subf %32, %46 : vector<2x4x128xf32>
    %cst_9 = arith.constant 9.99999974E-6 : f32
    %48 = vector.broadcast %cst_9 : f32 to vector<1x4x1xf32>
    %49 = arith.addf %45, %48 : vector<1x4x1xf32>
    %50 = math.rsqrt %49 : vector<1x4x1xf32>
    %51 = vector.broadcast %50 : vector<1x4x1xf32> to vector<2x4x128xf32>
    %52 = arith.mulf %47, %51 : vector<2x4x128xf32>
    %53 = tpu.iota {dimensions = array<i32: 2>} : vector<1x1x128xi32>
    %c3_i32 = arith.constant 3 : i32
    %54 = vector.broadcast %c3_i32 : i32 to vector<1x1x128xi32>
    %55 = arith.cmpi sge, %53, %54 : vector<1x1x128xi32>
    %c2_i32 = arith.constant 2 : i32
    %56 = vector.broadcast %c2_i32 : i32 to vector<1x1x128xi32>
    %57 = arith.cmpi sge, %53, %56 : vector<1x1x128xi32>
    %c1_i32 = arith.constant 1 : i32
    %58 = vector.broadcast %c1_i32 : i32 to vector<1x1x128xi32>
    %59 = arith.cmpi sge, %53, %58 : vector<1x1x128xi32>
    %c127_i32 = arith.constant 127 : i32
    %60 = vector.broadcast %c127_i32 : i32 to vector<1x1x128xi32>
    %61 = arith.cmpi slt, %53, %60 : vector<1x1x128xi32>
    %c126_i32 = arith.constant 126 : i32
    %62 = vector.broadcast %c126_i32 : i32 to vector<1x1x128xi32>
    %63 = arith.cmpi slt, %53, %62 : vector<1x1x128xi32>
    %c125_i32 = arith.constant 125 : i32
    %64 = vector.broadcast %c125_i32 : i32 to vector<1x1x128xi32>
    %65 = arith.cmpi slt, %53, %64 : vector<1x1x128xi32>
    %c0_10 = arith.constant 0 : index
    %c0_11 = arith.constant 0 : index
    %c0_12 = arith.constant 0 : index
    %66 = vector.load %arg3[%c0_10, %c0_11, %c0_12] : memref<4x7x1xf32, #tpu.memory_space<vmem>>, vector<4x7x1xf32>
    %c3_i32_13 = arith.constant 3 : i32
    %67 = tpu.dynamic_rotate %52 by %c3_i32_13 dim 2 : vector<2x4x128xf32>, i32 -> vector<2x4x128xf32>
    %cst_14 = arith.constant 0.000000e+00 : f32
    %68 = vector.shape_cast %55 : vector<1x1x128xi1> to vector<1x1x128xi1>
    %69 = vector.broadcast %68 : vector<1x1x128xi1> to vector<2x4x128xi1>
    %70 = vector.broadcast %cst_14 : f32 to vector<2x4x128xf32>
    %71 = arith.select %69, %67, %70 : vector<2x4x128xi1>, vector<2x4x128xf32>
    %72 = vector.extract_strided_slice %66 {offsets = [0, 0, 0], sizes = [4, 1, 1], strides = [1, 1, 1]} : vector<4x7x1xf32> to vector<4x1x1xf32>
    %73 = vector.shape_cast %72 : vector<4x1x1xf32> to vector<4x1xf32>
    %74 = vector.shape_cast %73 : vector<4x1xf32> to vector<1x4x1xf32>
    %75 = vector.broadcast %74 : vector<1x4x1xf32> to vector<2x4x128xf32>
    %76 = arith.mulf %71, %75 : vector<2x4x128xf32>
    %c2_i32_15 = arith.constant 2 : i32
    %77 = tpu.dynamic_rotate %52 by %c2_i32_15 dim 2 : vector<2x4x128xf32>, i32 -> vector<2x4x128xf32>
    %cst_16 = arith.constant 0.000000e+00 : f32
    %78 = vector.shape_cast %57 : vector<1x1x128xi1> to vector<1x1x128xi1>
    %79 = vector.broadcast %78 : vector<1x1x128xi1> to vector<2x4x128xi1>
    %80 = vector.broadcast %cst_16 : f32 to vector<2x4x128xf32>
    %81 = arith.select %79, %77, %80 : vector<2x4x128xi1>, vector<2x4x128xf32>
    %82 = vector.extract_strided_slice %66 {offsets = [0, 1, 0], sizes = [4, 1, 1], strides = [1, 1, 1]} : vector<4x7x1xf32> to vector<4x1x1xf32>
    %83 = vector.shape_cast %82 : vector<4x1x1xf32> to vector<4x1xf32>
    %84 = vector.shape_cast %83 : vector<4x1xf32> to vector<1x4x1xf32>
    %85 = vector.broadcast %84 : vector<1x4x1xf32> to vector<2x4x128xf32>
    %86 = arith.mulf %81, %85 : vector<2x4x128xf32>
    %87 = arith.addf %76, %86 : vector<2x4x128xf32>
    %c1_i32_17 = arith.constant 1 : i32
    %88 = tpu.dynamic_rotate %52 by %c1_i32_17 dim 2 : vector<2x4x128xf32>, i32 -> vector<2x4x128xf32>
    %cst_18 = arith.constant 0.000000e+00 : f32
    %89 = vector.shape_cast %59 : vector<1x1x128xi1> to vector<1x1x128xi1>
    %90 = vector.broadcast %89 : vector<1x1x128xi1> to vector<2x4x128xi1>
    %91 = vector.broadcast %cst_18 : f32 to vector<2x4x128xf32>
    %92 = arith.select %90, %88, %91 : vector<2x4x128xi1>, vector<2x4x128xf32>
    %93 = vector.extract_strided_slice %66 {offsets = [0, 2, 0], sizes = [4, 1, 1], strides = [1, 1, 1]} : vector<4x7x1xf32> to vector<4x1x1xf32>
    %94 = vector.shape_cast %93 : vector<4x1x1xf32> to vector<4x1xf32>
    %95 = vector.shape_cast %94 : vector<4x1xf32> to vector<1x4x1xf32>
    %96 = vector.broadcast %95 : vector<1x4x1xf32> to vector<2x4x128xf32>
    %97 = arith.mulf %92, %96 : vector<2x4x128xf32>
    %98 = arith.addf %87, %97 : vector<2x4x128xf32>
    %99 = vector.extract_strided_slice %66 {offsets = [0, 3, 0], sizes = [4, 1, 1], strides = [1, 1, 1]} : vector<4x7x1xf32> to vector<4x1x1xf32>
    %100 = vector.shape_cast %99 : vector<4x1x1xf32> to vector<4x1xf32>
    %101 = vector.shape_cast %100 : vector<4x1xf32> to vector<1x4x1xf32>
    %102 = vector.broadcast %101 : vector<1x4x1xf32> to vector<2x4x128xf32>
    %103 = arith.mulf %52, %102 : vector<2x4x128xf32>
    %104 = arith.addf %98, %103 : vector<2x4x128xf32>
    %c127_i32_19 = arith.constant 127 : i32
    %105 = tpu.dynamic_rotate %52 by %c127_i32_19 dim 2 : vector<2x4x128xf32>, i32 -> vector<2x4x128xf32>
    %cst_20 = arith.constant 0.000000e+00 : f32
    %106 = vector.shape_cast %61 : vector<1x1x128xi1> to vector<1x1x128xi1>
    %107 = vector.broadcast %106 : vector<1x1x128xi1> to vector<2x4x128xi1>
    %108 = vector.broadcast %cst_20 : f32 to vector<2x4x128xf32>
    %109 = arith.select %107, %105, %108 : vector<2x4x128xi1>, vector<2x4x128xf32>
    %110 = vector.extract_strided_slice %66 {offsets = [0, 4, 0], sizes = [4, 1, 1], strides = [1, 1, 1]} : vector<4x7x1xf32> to vector<4x1x1xf32>
    %111 = vector.shape_cast %110 : vector<4x1x1xf32> to vector<4x1xf32>
    %112 = vector.shape_cast %111 : vector<4x1xf32> to vector<1x4x1xf32>
    %113 = vector.broadcast %112 : vector<1x4x1xf32> to vector<2x4x128xf32>
    %114 = arith.mulf %109, %113 : vector<2x4x128xf32>
    %115 = arith.addf %104, %114 : vector<2x4x128xf32>
    %c126_i32_21 = arith.constant 126 : i32
    %116 = tpu.dynamic_rotate %52 by %c126_i32_21 dim 2 : vector<2x4x128xf32>, i32 -> vector<2x4x128xf32>
    %cst_22 = arith.constant 0.000000e+00 : f32
    %117 = vector.shape_cast %63 : vector<1x1x128xi1> to vector<1x1x128xi1>
    %118 = vector.broadcast %117 : vector<1x1x128xi1> to vector<2x4x128xi1>
    %119 = vector.broadcast %cst_22 : f32 to vector<2x4x128xf32>
    %120 = arith.select %118, %116, %119 : vector<2x4x128xi1>, vector<2x4x128xf32>
    %121 = vector.extract_strided_slice %66 {offsets = [0, 5, 0], sizes = [4, 1, 1], strides = [1, 1, 1]} : vector<4x7x1xf32> to vector<4x1x1xf32>
    %122 = vector.shape_cast %121 : vector<4x1x1xf32> to vector<4x1xf32>
    %123 = vector.shape_cast %122 : vector<4x1xf32> to vector<1x4x1xf32>
    %124 = vector.broadcast %123 : vector<1x4x1xf32> to vector<2x4x128xf32>
    %125 = arith.mulf %120, %124 : vector<2x4x128xf32>
    %126 = arith.addf %115, %125 : vector<2x4x128xf32>
    %c125_i32_23 = arith.constant 125 : i32
    %127 = tpu.dynamic_rotate %52 by %c125_i32_23 dim 2 : vector<2x4x128xf32>, i32 -> vector<2x4x128xf32>
    %cst_24 = arith.constant 0.000000e+00 : f32
    %128 = vector.shape_cast %65 : vector<1x1x128xi1> to vector<1x1x128xi1>
    %129 = vector.broadcast %128 : vector<1x1x128xi1> to vector<2x4x128xi1>
    %130 = vector.broadcast %cst_24 : f32 to vector<2x4x128xf32>
    %131 = arith.select %129, %127, %130 : vector<2x4x128xi1>, vector<2x4x128xf32>
    %132 = vector.extract_strided_slice %66 {offsets = [0, 6, 0], sizes = [4, 1, 1], strides = [1, 1, 1]} : vector<4x7x1xf32> to vector<4x1x1xf32>
    %133 = vector.shape_cast %132 : vector<4x1x1xf32> to vector<4x1xf32>
    %134 = vector.shape_cast %133 : vector<4x1xf32> to vector<1x4x1xf32>
    %135 = vector.broadcast %134 : vector<1x4x1xf32> to vector<2x4x128xf32>
    %136 = arith.mulf %131, %135 : vector<2x4x128xf32>
    %137 = arith.addf %126, %136 : vector<2x4x128xf32>
    %cst_25 = arith.constant dense<0.000000e+00> : vector<4xf32>
    %138 = vector.multi_reduction <add>, %137, %cst_25 [0, 2] : vector<2x4x128xf32> to vector<4xf32>
    %139 = vector.shape_cast %138 : vector<4xf32> to vector<1x4x1xf32>
    %140 = arith.mulf %137, %137 : vector<2x4x128xf32>
    %cst_26 = arith.constant dense<0.000000e+00> : vector<4xf32>
    %141 = vector.multi_reduction <add>, %140, %cst_26 [0, 2] : vector<2x4x128xf32> to vector<4xf32>
    %142 = vector.shape_cast %141 : vector<4xf32> to vector<1x4x1xf32>
    %cst_27 = arith.constant 3.906250e-03 : f32
    %143 = vector.broadcast %cst_27 : f32 to vector<1x4x1xf32>
    %144 = arith.mulf %139, %143 : vector<1x4x1xf32>
    %cst_28 = arith.constant 3.906250e-03 : f32
    %145 = vector.broadcast %cst_28 : f32 to vector<1x4x1xf32>
    %146 = arith.mulf %142, %145 : vector<1x4x1xf32>
    %147 = arith.mulf %144, %144 : vector<1x4x1xf32>
    %148 = arith.subf %146, %147 : vector<1x4x1xf32>
    %cst_29 = arith.constant 0.000000e+00 : f32
    %149 = vector.broadcast %cst_29 : f32 to vector<1x4x1xf32>
    %150 = arith.maximumf %148, %149 : vector<1x4x1xf32>
    %151 = vector.broadcast %144 : vector<1x4x1xf32> to vector<2x4x128xf32>
    %152 = arith.subf %137, %151 : vector<2x4x128xf32>
    %cst_30 = arith.constant 9.99999974E-6 : f32
    %153 = vector.broadcast %cst_30 : f32 to vector<1x4x1xf32>
    %154 = arith.addf %150, %153 : vector<1x4x1xf32>
    %155 = math.rsqrt %154 : vector<1x4x1xf32>
    %156 = vector.broadcast %155 : vector<1x4x1xf32> to vector<2x4x128xf32>
    %157 = arith.mulf %152, %156 : vector<2x4x128xf32>
    %158 = math.absf %157 : vector<2x4x128xf32>
    %c0_31 = arith.constant 0 : index
    %c0_32 = arith.constant 0 : index
    %c0_33 = arith.constant 0 : index
    %159 = vector.load %arg4[%c0_31, %c0_32, %c0_33] : memref<4x5x1xf32, #tpu.memory_space<vmem>>, vector<4x5x1xf32>
    %c2_i32_34 = arith.constant 2 : i32
    %160 = tpu.dynamic_rotate %158 by %c2_i32_34 dim 2 : vector<2x4x128xf32>, i32 -> vector<2x4x128xf32>
    %cst_35 = arith.constant 0.000000e+00 : f32
    %161 = vector.shape_cast %57 : vector<1x1x128xi1> to vector<1x1x128xi1>
    %162 = vector.broadcast %161 : vector<1x1x128xi1> to vector<2x4x128xi1>
    %163 = vector.broadcast %cst_35 : f32 to vector<2x4x128xf32>
    %164 = arith.select %162, %160, %163 : vector<2x4x128xi1>, vector<2x4x128xf32>
    %165 = vector.extract_strided_slice %159 {offsets = [0, 0, 0], sizes = [4, 1, 1], strides = [1, 1, 1]} : vector<4x5x1xf32> to vector<4x1x1xf32>
    %166 = vector.shape_cast %165 : vector<4x1x1xf32> to vector<4x1xf32>
    %167 = vector.shape_cast %166 : vector<4x1xf32> to vector<1x4x1xf32>
    %168 = vector.broadcast %167 : vector<1x4x1xf32> to vector<2x4x128xf32>
    %169 = arith.mulf %164, %168 : vector<2x4x128xf32>
    %c1_i32_36 = arith.constant 1 : i32
    %170 = tpu.dynamic_rotate %158 by %c1_i32_36 dim 2 : vector<2x4x128xf32>, i32 -> vector<2x4x128xf32>
    %cst_37 = arith.constant 0.000000e+00 : f32
    %171 = vector.shape_cast %59 : vector<1x1x128xi1> to vector<1x1x128xi1>
    %172 = vector.broadcast %171 : vector<1x1x128xi1> to vector<2x4x128xi1>
    %173 = vector.broadcast %cst_37 : f32 to vector<2x4x128xf32>
    %174 = arith.select %172, %170, %173 : vector<2x4x128xi1>, vector<2x4x128xf32>
    %175 = vector.extract_strided_slice %159 {offsets = [0, 1, 0], sizes = [4, 1, 1], strides = [1, 1, 1]} : vector<4x5x1xf32> to vector<4x1x1xf32>
    %176 = vector.shape_cast %175 : vector<4x1x1xf32> to vector<4x1xf32>
    %177 = vector.shape_cast %176 : vector<4x1xf32> to vector<1x4x1xf32>
    %178 = vector.broadcast %177 : vector<1x4x1xf32> to vector<2x4x128xf32>
    %179 = arith.mulf %174, %178 : vector<2x4x128xf32>
    %180 = arith.addf %169, %179 : vector<2x4x128xf32>
    %181 = vector.extract_strided_slice %159 {offsets = [0, 2, 0], sizes = [4, 1, 1], strides = [1, 1, 1]} : vector<4x5x1xf32> to vector<4x1x1xf32>
    %182 = vector.shape_cast %181 : vector<4x1x1xf32> to vector<4x1xf32>
    %183 = vector.shape_cast %182 : vector<4x1xf32> to vector<1x4x1xf32>
    %184 = vector.broadcast %183 : vector<1x4x1xf32> to vector<2x4x128xf32>
    %185 = arith.mulf %158, %184 : vector<2x4x128xf32>
    %186 = arith.addf %180, %185 : vector<2x4x128xf32>
    %c127_i32_38 = arith.constant 127 : i32
    %187 = tpu.dynamic_rotate %158 by %c127_i32_38 dim 2 : vector<2x4x128xf32>, i32 -> vector<2x4x128xf32>
    %cst_39 = arith.constant 0.000000e+00 : f32
    %188 = vector.shape_cast %61 : vector<1x1x128xi1> to vector<1x1x128xi1>
    %189 = vector.broadcast %188 : vector<1x1x128xi1> to vector<2x4x128xi1>
    %190 = vector.broadcast %cst_39 : f32 to vector<2x4x128xf32>
    %191 = arith.select %189, %187, %190 : vector<2x4x128xi1>, vector<2x4x128xf32>
    %192 = vector.extract_strided_slice %159 {offsets = [0, 3, 0], sizes = [4, 1, 1], strides = [1, 1, 1]} : vector<4x5x1xf32> to vector<4x1x1xf32>
    %193 = vector.shape_cast %192 : vector<4x1x1xf32> to vector<4x1xf32>
    %194 = vector.shape_cast %193 : vector<4x1xf32> to vector<1x4x1xf32>
    %195 = vector.broadcast %194 : vector<1x4x1xf32> to vector<2x4x128xf32>
    %196 = arith.mulf %191, %195 : vector<2x4x128xf32>
    %197 = arith.addf %186, %196 : vector<2x4x128xf32>
    %c126_i32_40 = arith.constant 126 : i32
    %198 = tpu.dynamic_rotate %158 by %c126_i32_40 dim 2 : vector<2x4x128xf32>, i32 -> vector<2x4x128xf32>
    %cst_41 = arith.constant 0.000000e+00 : f32
    %199 = vector.shape_cast %63 : vector<1x1x128xi1> to vector<1x1x128xi1>
    %200 = vector.broadcast %199 : vector<1x1x128xi1> to vector<2x4x128xi1>
    %201 = vector.broadcast %cst_41 : f32 to vector<2x4x128xf32>
    %202 = arith.select %200, %198, %201 : vector<2x4x128xi1>, vector<2x4x128xf32>
    %203 = vector.extract_strided_slice %159 {offsets = [0, 4, 0], sizes = [4, 1, 1], strides = [1, 1, 1]} : vector<4x5x1xf32> to vector<4x1x1xf32>
    %204 = vector.shape_cast %203 : vector<4x1x1xf32> to vector<4x1xf32>
    %205 = vector.shape_cast %204 : vector<4x1xf32> to vector<1x4x1xf32>
    %206 = vector.broadcast %205 : vector<1x4x1xf32> to vector<2x4x128xf32>
    %207 = arith.mulf %202, %206 : vector<2x4x128xf32>
    %208 = arith.addf %197, %207 : vector<2x4x128xf32>
    %cst_42 = arith.constant dense<0.000000e+00> : vector<4xf32>
    %209 = vector.multi_reduction <add>, %208, %cst_42 [0, 2] : vector<2x4x128xf32> to vector<4xf32>
    %210 = vector.shape_cast %209 : vector<4xf32> to vector<1x4x1xf32>
    %211 = arith.mulf %208, %208 : vector<2x4x128xf32>
    %cst_43 = arith.constant dense<0.000000e+00> : vector<4xf32>
    %212 = vector.multi_reduction <add>, %211, %cst_43 [0, 2] : vector<2x4x128xf32> to vector<4xf32>
    %213 = vector.shape_cast %212 : vector<4xf32> to vector<1x4x1xf32>
    %cst_44 = arith.constant 3.906250e-03 : f32
    %214 = vector.broadcast %cst_44 : f32 to vector<1x4x1xf32>
    %215 = arith.mulf %210, %214 : vector<1x4x1xf32>
    %cst_45 = arith.constant 3.906250e-03 : f32
    %216 = vector.broadcast %cst_45 : f32 to vector<1x4x1xf32>
    %217 = arith.mulf %213, %216 : vector<1x4x1xf32>
    %218 = arith.mulf %215, %215 : vector<1x4x1xf32>
    %219 = arith.subf %217, %218 : vector<1x4x1xf32>
    %cst_46 = arith.constant 0.000000e+00 : f32
    %220 = vector.broadcast %cst_46 : f32 to vector<1x4x1xf32>
    %221 = arith.maximumf %219, %220 : vector<1x4x1xf32>
    %222 = vector.broadcast %215 : vector<1x4x1xf32> to vector<2x4x128xf32>
    %223 = arith.subf %208, %222 : vector<2x4x128xf32>
    %cst_47 = arith.constant 9.99999974E-6 : f32
    %224 = vector.broadcast %cst_47 : f32 to vector<1x4x1xf32>
    %225 = arith.addf %221, %224 : vector<1x4x1xf32>
    %226 = math.rsqrt %225 : vector<1x4x1xf32>
    %227 = vector.broadcast %226 : vector<1x4x1xf32> to vector<2x4x128xf32>
    %228 = arith.mulf %223, %227 : vector<2x4x128xf32>
    %cst_48 = arith.constant 0.000000e+00 : f32
    %229 = vector.broadcast %cst_48 : f32 to vector<2x4x128xf32>
    %230 = arith.maximumf %228, %229 : vector<2x4x128xf32>
    %231 = vector.extract_strided_slice %230 {offsets = [0, 0, 0], sizes = [2, 1, 128], strides = [1, 1, 1]} : vector<2x4x128xf32> to vector<2x1x128xf32>
    %232 = vector.shape_cast %231 : vector<2x1x128xf32> to vector<2x128xf32>
    %c0_49 = arith.constant 0 : index
    %c0_50 = arith.constant 0 : index
    %c0_51 = arith.constant 0 : index
    %233 = vector.load %arg5[%c0_49, %c0_50, %c0_51] : memref<4x128x128xf32, #tpu.memory_space<vmem>>, vector<1x128x128xf32>
    %234 = vector.shape_cast %233 : vector<1x128x128xf32> to vector<128x128xf32>
    %cst_52 = arith.constant dense<0.000000e+00> : vector<2x128xf32>
    %235 = tpu.matmul %232, %234, %cst_52 {dimension_numbers = #tpu.dot_dimension_numbers<[1], [0], [0], [1], [0, 0, 1, 1], [], []>} : vector<2x128xf32>, vector<128x128xf32>, vector<2x128xf32> -> vector<2x128xf32>
    %236 = vector.extract_strided_slice %230 {offsets = [0, 1, 0], sizes = [2, 1, 128], strides = [1, 1, 1]} : vector<2x4x128xf32> to vector<2x1x128xf32>
    %237 = vector.shape_cast %236 : vector<2x1x128xf32> to vector<2x128xf32>
    %c1 = arith.constant 1 : index
    %c0_53 = arith.constant 0 : index
    %c0_54 = arith.constant 0 : index
    %238 = vector.load %arg5[%c1, %c0_53, %c0_54] : memref<4x128x128xf32, #tpu.memory_space<vmem>>, vector<1x128x128xf32>
    %239 = vector.shape_cast %238 : vector<1x128x128xf32> to vector<128x128xf32>
    %cst_55 = arith.constant dense<0.000000e+00> : vector<2x128xf32>
    %240 = tpu.matmul %237, %239, %cst_55 {dimension_numbers = #tpu.dot_dimension_numbers<[1], [0], [0], [1], [0, 0, 1, 1], [], []>} : vector<2x128xf32>, vector<128x128xf32>, vector<2x128xf32> -> vector<2x128xf32>
    %241 = arith.addf %235, %240 : vector<2x128xf32>
    %242 = vector.extract_strided_slice %230 {offsets = [0, 2, 0], sizes = [2, 1, 128], strides = [1, 1, 1]} : vector<2x4x128xf32> to vector<2x1x128xf32>
    %243 = vector.shape_cast %242 : vector<2x1x128xf32> to vector<2x128xf32>
    %c2 = arith.constant 2 : index
    %c0_56 = arith.constant 0 : index
    %c0_57 = arith.constant 0 : index
    %244 = vector.load %arg5[%c2, %c0_56, %c0_57] : memref<4x128x128xf32, #tpu.memory_space<vmem>>, vector<1x128x128xf32>
    %245 = vector.shape_cast %244 : vector<1x128x128xf32> to vector<128x128xf32>
    %cst_58 = arith.constant dense<0.000000e+00> : vector<2x128xf32>
    %246 = tpu.matmul %243, %245, %cst_58 {dimension_numbers = #tpu.dot_dimension_numbers<[1], [0], [0], [1], [0, 0, 1, 1], [], []>} : vector<2x128xf32>, vector<128x128xf32>, vector<2x128xf32> -> vector<2x128xf32>
    %247 = arith.addf %241, %246 : vector<2x128xf32>
    %248 = vector.extract_strided_slice %230 {offsets = [0, 3, 0], sizes = [2, 1, 128], strides = [1, 1, 1]} : vector<2x4x128xf32> to vector<2x1x128xf32>
    %249 = vector.shape_cast %248 : vector<2x1x128xf32> to vector<2x128xf32>
    %c3 = arith.constant 3 : index
    %c0_59 = arith.constant 0 : index
    %c0_60 = arith.constant 0 : index
    %250 = vector.load %arg5[%c3, %c0_59, %c0_60] : memref<4x128x128xf32, #tpu.memory_space<vmem>>, vector<1x128x128xf32>
    %251 = vector.shape_cast %250 : vector<1x128x128xf32> to vector<128x128xf32>
    %cst_61 = arith.constant dense<0.000000e+00> : vector<2x128xf32>
    %252 = tpu.matmul %249, %251, %cst_61 {dimension_numbers = #tpu.dot_dimension_numbers<[1], [0], [0], [1], [0, 0, 1, 1], [], []>} : vector<2x128xf32>, vector<128x128xf32>, vector<2x128xf32> -> vector<2x128xf32>
    %253 = arith.addf %247, %252 : vector<2x128xf32>
    %254 = vector.shape_cast %253 : vector<2x128xf32> to vector<1x2x128xf32>
    %c0_62 = arith.constant 0 : index
    %c0_63 = arith.constant 0 : index
    %c0_64 = arith.constant 0 : index
    %255 = vector.load %arg6[%c0_62, %c0_63, %c0_64] : memref<1x2x128xf32, #tpu.memory_space<vmem>>, vector<1x2x128xf32>
    tpu.vector_store %arg6[%c0_62, %c0_63, %c0_64], %254 {strides = array<i32>} : memref<1x2x128xf32, #tpu.memory_space<vmem>>, vector<1x2x128xf32>,
    return
  }
  func.func @transform_0(%arg0: i32) -> (i32, i32, i32) {
    %c0_i32 = arith.constant 0 : i32
    %c0_i32_0 = arith.constant 0 : i32
    %c0_i32_1 = arith.constant 0 : i32
    %c0_i32_2 = arith.constant 0 : i32
    return %c0_i32, %c0_i32_0, %c0_i32_1 : i32, i32, i32
  }
  func.func @transform_1(%arg0: i32) -> (i32, i32, i32) {
    %c0_i32 = arith.constant 0 : i32
    %c0_i32_0 = arith.constant 0 : i32
    %c0_i32_1 = arith.constant 0 : i32
    return %arg0, %c0_i32, %c0_i32_0 : i32, i32, i32
  }
  func.func @transform_2(%arg0: i32) -> (i32, i32, i32) {
    %c0_i32 = arith.constant 0 : i32
    %c0_i32_0 = arith.constant 0 : i32
    %c0_i32_1 = arith.constant 0 : i32
    return %arg0, %c0_i32, %c0_i32_0 : i32, i32, i32
  }
  func.func @transform_3(%arg0: i32) -> (i32, i32, i32) {
    %c0_i32 = arith.constant 0 : i32
    %c0_i32_0 = arith.constant 0 : i32
    %c0_i32_1 = arith.constant 0 : i32
    return %arg0, %c0_i32, %c0_i32_0 : i32, i32, i32
  }
  func.func @transform_4(%arg0: i32) -> (i32, i32, i32) {
    %c0_i32 = arith.constant 0 : i32
    %c0_i32_0 = arith.constant 0 : i32
    %c0_i32_1 = arith.constant 0 : i32
    return %arg0, %c0_i32, %c0_i32_0 : i32, i32, i32
  }
  func.func @transform_5(%arg0: i32) -> (i32, i32, i32) {
    %c0_i32 = arith.constant 0 : i32
    %c0_i32_0 = arith.constant 0 : i32
    %c0_i32_1 = arith.constant 0 : i32
    return %arg0, %c0_i32, %c0_i32_0 : i32, i32, i32
  }
}

</mosaic_0001>

<bundles_post_ra>
// kernel: eeg_simplenet_forward.1
= control target key start
LH: loop header
LB: loop body
LE: loop exit
PB: predicated region body
PF: predicated region fallthrough
CT: control target
= control target key end

     0   :  { %s1623_s18 = smov 0   ;;  %s1993_s0 = inlined_call_operand.vmem [shape: f32[2,4,128], index: 0, kind: input, shape index: {}]   ;;  %s1994_s1 = inlined_call_operand.vmem [shape: f32[8,4,1], index: 1, kind: input, shape index: {}]   ;;  %s1995_s2 = inlined_call_operand.vmem [shape: f32[8,7,1], index: 2, kind: input, shape index: {}]   ;;  %s1996_s3 = inlined_call_operand.vmem [shape: f32[8,5,1], index: 3, kind: input, shape index: {}]   ;;  %s1997_s4 = inlined_call_operand.vmem [shape: f32[8,128,128], index: 4, kind: input, shape index: {}]   ;;  %s1998_s5 = inlined_call_operand.vmem [shape: f32[2,2,128], index: 5, kind: output, shape index: {}]  }
   0x1 LB: > { %s1629_s19 = sadd.s32 4294967295, %s1581_s18   ;;  %p1178_p0 = scmp.ge.s32.totalorder %s1581_s18, 1  ;;  %s1581_s18 = sphi %s1623_s18, %s15_s18  }
   0x2   : > { %p222_p1 = scmp.lt.s32.totalorder %s1581_s18, 3 }
   0x4   : > { %p223_p2 = pnand %p1178_p0, %p222_p1 }
   0x5   : > { %s1179_s20 = sshll.u32 (!%p223_p2), %s1629_s19, 2  ;;  %v1583_v0 = vmov (!%p223_p2), 0   ;;  %v300_v5 = vlaneseq (!%p223_p2)  ;;  %v294_v9 = vld [vmem:[%s1993_s0] sm:$0xf] (!%p223_p2)  ;;  %v295_v10 = vld [vmem:[%s1993_s0 + $0x4] sm:$0xf] (!%p223_p2) }
   0x6   : > { %226 = sbr.rel (%p223_p2) target bundleno = 1192 (0x4a8), region = 40  ;;  %1568 = vset.pattern.permute.xlu1 (!%p223_p2), %v1583_v0  ;;  %1567 = vset.pattern.permute.xlu0 (!%p223_p2), %v1583_v0  ;;  %p266_p3 = scmp.lt.s32.totalorder (!%p223_p2), %s1179_s20, 7  ;;  %vm325_vm0 = vcmask (!%p223_p2), 1041409   ;;  %vm328_vm1 = vcmask (!%p223_p2), 1042434   ;;  %vm331_vm2 = vcmask (!%p223_p2), 1043459   ;;  %vm393_vm3 = vcmask (!%p223_p2), 1043456  }
   0x7   : > { %v301_v6 = vshrl.u32 (!%p223_p2), %v300_v5, 7  ;;  %s1584_s8 = smov (!%p223_p2), 3   ;;  %s1585_s9 = smov (!%p223_p2), 2   ;;  %vm1591_vm10 = vmmov (!%p223_p2), 0  }
   0x8   : > { %s1586_s10 = smov (!%p223_p2), 1   ;;  %s1587_s11 = smov (!%p223_p2), 127  }
   0x9   : > { %v338_v7 = vsub.s32 (!%p223_p2), 1, %v301_v6  ;;  %v302_v8 = vsub.s32 (!%p223_p2), 0, %v301_v6  ;;  %v357_v11 = vsub.s32 (!%p223_p2), 2, %v301_v6  ;;  %v376_v14 = vsub.s32 (!%p223_p2), 3, %v301_v6  ;;  %s1588_s12 = smov (!%p223_p2), 126   ;;  %s1589_s13 = smov (!%p223_p2), 125  }
   0xa   : > { %p290_p4 = scmp.lt.s32.totalorder (!%p223_p2), %s1629_s19, 1 }
   0xb   : > { %v339_v15 = vrot.slane (!%p223_p2), %v294_v9, %v338_v7  ;;  %v343_v16 = vrot.slane (!%p223_p2), %v295_v10, %v338_v7  ;;  %v303_v17 = vrot.slane (!%p223_p2), %v294_v9, %v302_v8  ;;  %v307_v19 = vrot.slane (!%p223_p2), %v295_v10, %v302_v8 }
   0xc   : > { %v358_v20 = vrot.slane (!%p223_p2), %v294_v9, %v357_v11  ;;  %v362_v21 = vrot.slane (!%p223_p2), %v295_v10, %v357_v11  ;;  %v377_v26 = vrot.slane (!%p223_p2), %v294_v9, %v376_v14  ;;  %v381_v27 = vrot.slane (!%p223_p2), %v295_v10, %v376_v14 }
   0xd   : > { %s2000_s20 = smov (!%p266_p3, %s1179_s20), 7  ;;  %s2002_s19 = smov (!%p290_p4, %s1629_s19), 1 }
   0xe   : > { %s1180_s21 = sshll.u32 %s2000_s20, 2  ;;  %s1182_s29 = sshll.u32 %s2000_s20, 3 }
   0xf   : > { %s269_s24 = scalar_lea.vmem %s1994_s1, %s1180_s21  ;;  %s275_s7 = scalar_lea.vmem %s1995_s2, %s1182_s29 }
  0x10   : > { %v298_v1 = vld [vmem:[%s269_s24 + $0x8] sm:$0xf]  ;;  %v296_v2 = vld [vmem:[%s269_s24] sm:$0xf]  ;;  %v299_v3 = vld [vmem:[%s269_s24 + $0xc] sm:$0xf]  ;;  %s281_s16 = scalar_lea.vmem %s1996_s3, %s1182_s29 }
  0x11   : > { %318 = vperm.xlu1 %1568, %v298_v1   ;;  %310 = vperm.xlu0 %1567, %v296_v2   ;;  %v297_v4 = vld [vmem:[%s269_s24 + $0x4] sm:$0xf]  ;;  %v426_v8 = vld [vmem:[%s275_s7 + $0x8] sm:$0x7f]  ;;  %v428_v10 = vld [vmem:[%s275_s7 + $0x18] sm:$0x7f] }
  0x12   : > { %v425_v9 = vld [vmem:[%s275_s7] sm:$0x7f]  ;;  %v427_v11 = vld [vmem:[%s275_s7 + $0x10] sm:$0x7f]  ;;  %s1239_s17 = sshll.u32 %s2000_s20, 7  ;;  %s1188_s20 = sshll.u32 %s2002_s19, 1 }
  0x13   : > { %s1806_s23 = scalar_lea.vmem %s1997_s4, %s1239_s17  ;;  %s293_s26 = scalar_lea.vmem %s1998_s5, %s1188_s20 }
  0x15   : > { %322 = vperm.xlu1 %1568, %v299_v3   ;;  %314 = vperm.xlu0 %1567, %v297_v4  }
  0x90   : > { %v319_v12 = vpop.permute.xlu1 %318  ;;  %v311_v13 = vpop.permute.xlu0 %310 }
  0x91   : > { %v346_v18 = vrot.slane %v319_v12, 7  ;;  %v327_v22 = vrot.slane %v319_v12, 6  ;;  %v344_v23 = vrot.slane %v311_v13, 1  ;;  %v385_v28 = vrot.slane %v319_v12, 1 }
  0x92   : > { %v363_v29 = vrot.slane %v311_v13, 2  ;;  %v382_v32 = vrot.slane %v311_v13, 3 }
  0x94   : > { %v323_v24 = vpop.permute.xlu1 %322  ;;  %v315_v25 = vpop.permute.xlu0 %314 }
  0x95   : > { %v348_v30 = vrot.slane %v323_v24, 6  ;;  %v324_v31 = vrot.slane %v315_v25, 7  ;;  %v345_v33 = vsel %vm325_vm0, %v315_v25, %v344_v23  ;;  %v364_v34 = vrot.slane %v315_v25, 1 }
  0x96   : > { %v383_v35 = vrot.slane %v315_v25, 2  ;;  %v330_v36 = vrot.slane %v323_v24, 5  ;;  %v367_v37 = vrot.slane %v323_v24, 7  ;;  %v347_v39 = vsel %vm328_vm1, %v346_v18, %v345_v33 }
  0x97   : > { %v326_v38 = vsel %vm325_vm0, %v324_v31, %v311_v13  ;;  %v349_v41 = vsel %vm331_vm2, %v348_v30, %v347_v39  ;;  %v365_v42 = vsel %vm325_vm0, %v364_v34, %v363_v29  ;;  %v1703_v30 = vand.u32 127, %v300_v5 }
  0x98   : > { %v329_v40 = vsel %vm328_vm1, %v327_v22, %v326_v38  ;;  %v384_v43 = vsel %vm325_vm0, %v383_v35, %v382_v32  ;;  %v351_v44 = vmul.f32 %v349_v41, %v339_v15  ;;  %v352_v45 = vmul.f32 %v349_v41, %v343_v16 }
  0x99   : > { %v366_v46 = vsel %vm328_vm1, %v319_v12, %v365_v42  ;;  %v332_v47 = vsel %vm331_vm2, %v330_v36, %v329_v40  ;;  %v386_v51 = vsel %vm328_vm1, %v385_v28, %v384_v43  ;;  %vm419_vm4 = vcmp.ge.s32.totalorder %v1703_v30, 3 }
  0x9a   : > { %v334_v48 = vmul.f32 %v332_v47, %v303_v17  ;;  %v335_v49 = vmul.f32 %v332_v47, %v307_v19  ;;  %v368_v50 = vsel %vm331_vm2, %v367_v37, %v366_v46  ;;  %v387_v52 = vsel %vm331_vm2, %v323_v24, %v386_v51 }
  0x9b   : > { %v370_v55 = vmul.f32 %v368_v50, %v358_v20  ;;  %v371_v56 = vmul.f32 %v368_v50, %v362_v21  ;;  %v389_v59 = vmul.f32 %v387_v52, %v377_v26  ;;  %v390_v60 = vmul.f32 %v387_v52, %v381_v27 }
  0x9c   : > { %v353_v53 = vadd.f32 %v351_v44, %v334_v48  ;;  %v354_v54 = vadd.f32 %v352_v45, %v335_v49  ;;  %vm420_vm5 = vcmp.ge.s32.totalorder %v1703_v30, 2  ;;  %vm421_vm6 = vcmp.ge.s32.totalorder %v1703_v30, 1 }
  0x9d   : > { %vm422_vm7 = vcmp.lt.s32.totalorder %v1703_v30, 127  ;;  %vm423_vm8 = vcmp.lt.s32.totalorder %v1703_v30, 126  ;;  %vm424_vm9 = vcmp.lt.s32.totalorder %v1703_v30, 125 }
  0x9e   : > { %v372_v57 = vadd.f32 %v370_v55, %v353_v53  ;;  %v373_v58 = vadd.f32 %v371_v56, %v354_v54 }
  0xa0   : > { %v391_v61 = vadd.f32 %v389_v59, %v372_v57  ;;  %v392_v62 = vadd.f32 %v390_v60, %v373_v58 }
  0xa2   : > { %v394_v63 = vsel %vm393_vm3, %v391_v61, 0.0  ;;  %v395_v0 = vsel %vm393_vm3, %v392_v62, 0.0  ;;  %v399_v1 = vmul.f32 %v391_v61, %v391_v61  ;;  %v400_v2 = vmul.f32 %v392_v62, %v392_v62 }
  0xa3   : > { %v396_v3 = vadd.f32 %v395_v0, %v394_v63 }
  0xa4   : > { %v401_v4 = vsel %vm393_vm3, %v399_v1, 0.0  ;;  %v402_v6 = vsel %vm393_vm3, %v400_v2, 0.0 }
  0xa5   : > { %397 = vadd.xlane.f32.xlu0 %v396_v3  ;;  %v403_v7 = vadd.f32 %v402_v6, %v401_v4 }
  0xa7   : > { %404 = vadd.xlane.f32.xlu1 %v403_v7 }
  0xb8   : > { %443 = vperm.xlu1 %1568, %v426_v8  }
  0xbb   : > { %439 = vperm.xlu0 %1567, %v425_v9  }
  0xbc   : > { %451 = vperm.xlu1 %1568, %v428_v10  }
  0xbf   : > { %447 = vperm.xlu0 %1567, %v427_v11  }
 0x132   : > { %v398_v12 = vpop.xlane.xlu0 %397 }
 0x133   : > { %v406_v13 = vmul.f32 0.00390625, %v398_v12 }
 0x134   : > { %v405_v14 = vpop.xlane.xlu1 %404 }
 0x135   : > { %v407_v15 = vmul.f32 0.00390625, %v405_v14  ;;  %v408_v16 = vmul.f32 %v406_v13, %v406_v13  ;;  %v411_v20 = vsub.f32 %v391_v61, %v406_v13  ;;  %v412_v21 = vsub.f32 %v392_v62, %v406_v13 }
 0x137   : > { %v409_v17 = vsub.f32 %v407_v15, %v408_v16 }
 0x138   : > { %v1695_v26 = vpop.permute.xlu1 %443 }
 0x139   : > { %v410_v18 = vmax.f32 %v409_v17, 0.0  ;;  %v453_v33 = vrot.slane %v1695_v26, 7  ;;  %v490_v34 = vrot.slane %v1695_v26, 1  ;;  %v501_v39 = vrot.slane %v1695_v26, 2 }
 0x13a   : > { %v1693_v25 = vpop.permute.xlu0 %439  ;;  %v520_v42 = vrot.slane %v1695_v26, 3  ;;  %v540_v43 = vrot.slane %v1695_v26, 4 }
 0x13b   : > { %v413_v19 = vadd.f32 1e-05, %v410_v18  ;;  %v470_v29 = vrot.slane %v1693_v25, 1  ;;  %v489_v32 = vrot.slane %v1693_v25, 2  ;;  %v500_v44 = vrot.slane %v1693_v25, 3 }
 0x13c   : > { %v1699_v28 = vpop.permute.xlu1 %451  ;;  %v454_v46 = vsel %vm325_vm0, %v453_v33, %v1693_v25  ;;  %v519_v60 = vrot.slane %v1693_v25, 4  ;;  %v539_v0 = vrot.slane %v1693_v25, 5  ;;  %v559_v17 = vrot.slane %v1693_v25, 6 }
 0x13d   : > { %1569 = vrsqrt.f32 %v413_v19  ;;  %v471_v38 = vsel %vm325_vm0, %v1695_v26, %v470_v29  ;;  %v491_v40 = vsel %vm325_vm0, %v490_v34, %v489_v32  ;;  %v474_v41 = vrot.slane %v1699_v28, 6 }
 0x13e   : > { %v1697_v27 = vpop.permute.xlu0 %447  ;;  %v457_v45 = vrot.slane %v1699_v28, 5  ;;  %v493_v47 = vrot.slane %v1699_v28, 7  ;;  %v502_v63 = vsel %vm325_vm0, %v501_v39, %v500_v44  ;;  %v524_v15 = vrot.slane %v1699_v28, 1 }
 0x13f   : > { %v472_v31 = vrot.slane %v1697_v27, 7  ;;  %v455_v36 = vrot.slane %v1697_v27, 6  ;;  %v492_v52 = vsel %vm328_vm1, %v1697_v27, %v491_v40  ;;  %v503_v53 = vrot.slane %v1697_v27, 1 }
 0x140   : > { %v494_v62 = vsel %vm331_vm2, %v493_v47, %v492_v52  ;;  %v522_v7 = vrot.slane %v1697_v27, 2  ;;  %v542_v10 = vrot.slane %v1697_v27, 3  ;;  %v521_v16 = vsel %vm325_vm0, %v520_v42, %v519_v60 }
 0x141   : > { %v473_v5 = vsel %vm328_vm1, %v472_v31, %v471_v38  ;;  %v456_v48 = vsel %vm328_vm1, %v455_v36, %v454_v46  ;;  %v504_v6 = vsel %vm328_vm1, %v503_v53, %v502_v63  ;;  %v541_v29 = vsel %vm325_vm0, %v540_v43, %v539_v0 }
 0x142   : > { %v475_v50 = vsel %vm331_vm2, %v474_v41, %v473_v5  ;;  %v458_v61 = vsel %vm331_vm2, %v457_v45, %v456_v48  ;;  %v505_v31 = vsel %vm331_vm2, %v1699_v28, %v504_v6  ;;  %v562_v34 = vrot.slane %v1697_v27, 4  ;;  %v597_v6 = vld [vmem:[%s281_s16 + $0x8] sm:$0x1f] }
 0x143   : > { %v543_v36 = vsel %vm328_vm1, %v542_v10, %v541_v29  ;;  %v544_v38 = vrot.slane %v1699_v28, 2  ;;  %v560_v39 = vrot.slane %v1695_v26, 5  ;;  %v564_v48 = vrot.slane %v1699_v28, 3 }
 0x145   : > { %v561_v45 = vsel %vm325_vm0, %v560_v39, %v559_v17 }
 0x146   : > { %v563_v26 = vsel %vm328_vm1, %v562_v34, %v561_v45  ;;  %v1205_v34 = vld [vmem:[%s1806_s23 + $0x100] sm:$0xff] }
 0x147   : > { %v1570_v22 = vpop.eup %1569 }
 0x148   : > { %v1669_v23 = vmul.f32 %v1570_v22, %v411_v20  ;;  %v1671_v24 = vmul.f32 %v1570_v22, %v412_v21  ;;  %v523_v21 = vsel %vm328_vm1, %v522_v7, %v521_v16  ;;  %v596_v7 = vld [vmem:[%s281_s16] sm:$0x1f] }
 0x14a   : > { %431 = vrot.lane.b32.xlu1 %v1671_v24, %s1584_s8  ;;  %429 = vrot.lane.b32.xlu0 %v1669_v23, %s1584_s8  ;;  %v508_v25 = vmul.f32 %v505_v31, %v1671_v24 }
 0x14e   : > { %464 = vrot.lane.b32.xlu1 %v1671_v24, %s1585_s9  ;;  %462 = vrot.lane.b32.xlu0 %v1669_v23, %s1585_s9 }
 0x152   : > { %483 = vrot.lane.b32.xlu1 %v1671_v24, %s1586_s10  ;;  %481 = vrot.lane.b32.xlu0 %v1669_v23, %s1586_s10 }
 0x156   : > { %513 = vrot.lane.b32.xlu1 %v1671_v24, %s1587_s11  ;;  %511 = vrot.lane.b32.xlu0 %v1669_v23, %s1587_s11 }
 0x15a   : > { %533 = vrot.lane.b32.xlu1 %v1671_v24, %s1588_s12  ;;  %531 = vrot.lane.b32.xlu0 %v1669_v23, %s1588_s12 }
 0x15e   : > { %553 = vrot.lane.b32.xlu1 %v1671_v24, %s1589_s13  ;;  %551 = vrot.lane.b32.xlu0 %v1669_v23, %s1589_s13 }
 0x1bc   : > { %v432_v35 = vpop.permute.xlu1 %431  ;;  %v430_v37 = vpop.permute.xlu0 %429 }
 0x1bd   : > { %v436_v54 = vsel %vm419_vm4, %v432_v35, 0.0  ;;  %v435_v55 = vsel %vm419_vm4, %v430_v37, 0.0  ;;  %v507_v35 = vmul.f32 %v505_v31, %v1669_v23  ;;  %v525_v37 = vsel %vm331_vm2, %v524_v15, %v523_v21 }
 0x1be   : > { %v461_v1 = vmul.f32 %v458_v61, %v436_v54  ;;  %v460_v2 = vmul.f32 %v458_v61, %v435_v55  ;;  %v545_v23 = vsel %vm331_vm2, %v544_v38, %v543_v36  ;;  %v565_v54 = vsel %vm331_vm2, %v564_v48, %v563_v26  ;;  %v1206_v36 = vld [vmem:[%s1806_s23 + $0x108] sm:$0xff] }
 0x1c0   : > { %v465_v49 = vpop.permute.xlu1 %464  ;;  %v463_v51 = vpop.permute.xlu0 %462 }
 0x1c1   : > { %v469_v56 = vsel %vm420_vm5, %v465_v49, 0.0  ;;  %v468_v57 = vsel %vm420_vm5, %v463_v51, 0.0 }
 0x1c2   : > { %v478_v58 = vmul.f32 %v475_v50, %v469_v56  ;;  %v477_v59 = vmul.f32 %v475_v50, %v468_v57 }
 0x1c4   : > { %v484_v3 = vpop.permute.xlu1 %483  ;;  %v482_v4 = vpop.permute.xlu0 %481  ;;  %v480_v11 = vadd.f32 %v478_v58, %v461_v1  ;;  %v479_v12 = vadd.f32 %v477_v59, %v460_v2 }
 0x1c5   : > { %v488_v8 = vsel %vm421_vm6, %v484_v3, 0.0  ;;  %v487_v9 = vsel %vm421_vm6, %v482_v4, 0.0 }
 0x1c6   : > { %v497_v13 = vmul.f32 %v494_v62, %v488_v8  ;;  %v496_v14 = vmul.f32 %v494_v62, %v487_v9  ;;  %v599_v8 = vld [vmem:[%s281_s16 + $0x18] sm:$0x1f]  ;;  %v598_v9 = vld [vmem:[%s281_s16 + $0x10] sm:$0x1f] }
 0x1c8   : > { %v499_v18 = vadd.f32 %v497_v13, %v480_v11  ;;  %v498_v19 = vadd.f32 %v496_v14, %v479_v12  ;;  %v514_v20 = vpop.permute.xlu1 %513  ;;  %v512_v22 = vpop.permute.xlu0 %511 }
 0x1c9   : > { %v518_v32 = vsel %vm422_vm7, %v514_v20, 0.0  ;;  %v517_v33 = vsel %vm422_vm7, %v512_v22, 0.0 }
 0x1ca   : > { %v510_v5 = vadd.f32 %v508_v25, %v499_v18  ;;  %v528_v40 = vmul.f32 %v525_v37, %v518_v32  ;;  %v509_v41 = vadd.f32 %v507_v35, %v498_v19  ;;  %v527_v42 = vmul.f32 %v525_v37, %v517_v33  ;;  %v1189_v32 = vld [vmem:[%s1806_s23 + $0x80] sm:$0xff]  ;;  %v1190_v33 = vld [vmem:[%s1806_s23 + $0x88] sm:$0xff] }
 0x1cb   : > { %v1590_v25 = vmov 0.0|0.0   ;;  %v1449_v35 = vpack.c.bf16 %v1190_v33, %v1189_v32  ;;  %v1497_v37 = vpack.c.bf16 %v1206_v36, %v1205_v34 }
 0x1cc   : > { %v534_v43 = vpop.permute.xlu1 %533  ;;  %v532_v27 = vpop.permute.xlu0 %531  ;;  %v530_v49 = vadd.f32 %v528_v40, %v510_v5  ;;  %v529_v50 = vadd.f32 %v527_v42, %v509_v41  ;;  %1448 = vmatprep.subr.bf16.mxu1 %v1590_v25  ;;  %1496 = vmatprep.subr.bf16.mxu0 %v1590_v25 }
 0x1cd   : > { %v538_v24 = vsel %vm423_vm8, %v534_v43, 0.0  ;;  %v537_v44 = vsel %vm423_vm8, %v532_v27, 0.0  ;;  %1450 = vmatpush3.bf16.msra.mxu1 %v1449_v35  ;;  %1498 = vmatpush3.bf16.msra.mxu0 %v1497_v37 }
 0x1ce   : > { %v548_v46 = vmul.f32 %v545_v23, %v538_v24  ;;  %v547_v47 = vmul.f32 %v545_v23, %v537_v44  ;;  %1451 = vmatprep.subr.bf16.mxu1 %v1590_v25  ;;  %1499 = vmatprep.subr.bf16.mxu0 %v1590_v25 }
 0x1d0   : > { %v554_v51 = vpop.permute.xlu1 %553  ;;  %v552_v52 = vpop.permute.xlu0 %551  ;;  %v550_v56 = vadd.f32 %v548_v46, %v530_v49  ;;  %v549_v57 = vadd.f32 %v547_v47, %v529_v50 }
 0x1d1   : > { %v558_v53 = vsel %vm424_vm9, %v554_v51, 0.0  ;;  %v557_v55 = vsel %vm424_vm9, %v552_v52, 0.0 }
 0x1d2   : > { %v568_v58 = vmul.f32 %v565_v54, %v558_v53  ;;  %v567_v59 = vmul.f32 %v565_v54, %v557_v55 }
 0x1d4   : > { %v570_v60 = vadd.f32 %v568_v58, %v550_v56  ;;  %v569_v61 = vadd.f32 %v567_v59, %v549_v57 }
 0x1d6   : > { %v571_v62 = vsel %vm393_vm3, %v569_v61, 0.0  ;;  %v572_v63 = vsel %vm393_vm3, %v570_v60, 0.0  ;;  %v576_v28 = vmul.f32 %v569_v61, %v569_v61  ;;  %v577_v0 = vmul.f32 %v570_v60, %v570_v60 }
 0x1d7   : > { %v573_v1 = vadd.f32 %v572_v63, %v571_v62 }
 0x1d8   : > { %v578_v2 = vsel %vm393_vm3, %v576_v28, 0.0  ;;  %v579_v3 = vsel %vm393_vm3, %v577_v0, 0.0 }
 0x1d9   : > { %574 = vadd.xlane.f32.xlu0 %v573_v1  ;;  %v580_v4 = vadd.f32 %v579_v3, %v578_v2 }
 0x1db   : > { %581 = vadd.xlane.f32.xlu1 %v580_v4 }
 0x1ec   : > { %612 = vperm.xlu1 %1568, %v597_v6  }
 0x1ef   : > { %608 = vperm.xlu0 %1567, %v596_v7  }
 0x1f0   : > { %620 = vperm.xlu1 %1568, %v599_v8  }
 0x1f3   : > { %616 = vperm.xlu0 %1567, %v598_v9  }
 0x266   : > { %v575_v10 = vpop.xlane.xlu0 %574 }
 0x267   : > { %v583_v11 = vmul.f32 0.00390625, %v575_v10 }
 0x268   : > { %v582_v12 = vpop.xlane.xlu1 %581 }
 0x269   : > { %v584_v13 = vmul.f32 0.00390625, %v582_v12  ;;  %v585_v14 = vmul.f32 %v583_v11, %v583_v11  ;;  %v588_v18 = vsub.f32 %v569_v61, %v583_v11  ;;  %v589_v19 = vsub.f32 %v570_v60, %v583_v11 }
 0x26b   : > { %v586_v15 = vsub.f32 %v584_v13, %v585_v14 }
 0x26c   : > { %v613_v39 = vpop.permute.xlu1 %612 }
 0x26d   : > { %v587_v16 = vmax.f32 %v586_v15, 0.0  ;;  %v622_v41 = vrot.slane %v613_v39, 7  ;;  %v649_v23 = vrot.slane %v613_v39, 1  ;;  %v666_v45 = vrot.slane %v613_v39, 2 }
 0x26e   : > { %v609_v38 = vpop.permute.xlu0 %608  ;;  %v683_v60 = vrot.slane %v613_v39, 3 }
 0x26f   : > { %v590_v17 = vadd.f32 1e-05, %v587_v16  ;;  %v637_v42 = vrot.slane %v609_v38, 1  ;;  %v648_v43 = vrot.slane %v609_v38, 2  ;;  %v665_v44 = vrot.slane %v609_v38, 3 }
 0x270   : > { %v621_v40 = vpop.permute.xlu1 %620  ;;  %v682_v48 = vrot.slane %v609_v38, 4  ;;  %v623_v50 = vsel %vm325_vm0, %v622_v41, %v609_v38 }
 0x271   : > { %1571 = vrsqrt.f32 %v590_v17  ;;  %v650_v49 = vsel %vm325_vm0, %v649_v23, %v648_v43  ;;  %v638_v51 = vsel %vm325_vm0, %v613_v39, %v637_v42  ;;  %v652_v52 = vrot.slane %v621_v40, 7 }
 0x272   : > { %v617_v5 = vpop.permute.xlu0 %616  ;;  %v626_v53 = vrot.slane %v621_v40, 5  ;;  %v641_v58 = vrot.slane %v621_v40, 6  ;;  %v667_v59 = vsel %vm325_vm0, %v666_v45, %v665_v44  ;;  %v684_v11 = vsel %vm325_vm0, %v683_v60, %v682_v48  ;;  %v1192_v48 = vld [vmem:[%s1806_s23 + $0x98] sm:$0xff] }
 0x273   : > { %v624_v27 = vrot.slane %v617_v5, 6  ;;  %v639_v24 = vrot.slane %v617_v5, 7  ;;  %v668_v46 = vrot.slane %v617_v5, 1  ;;  %v651_v61 = vsel %vm328_vm1, %v617_v5, %v650_v49  ;;  %v1207_v49 = vld [vmem:[%s1806_s23 + $0x110] sm:$0xff]  ;;  %v1196_v60 = vld [vmem:[%s1806_s23 + $0xb8] sm:$0xff] }
 0x274   : > { %v685_v62 = vrot.slane %v617_v5, 2  ;;  %v653_v10 = vsel %vm331_vm2, %v652_v52, %v651_v61  ;;  %v687_v35 = vrot.slane %v621_v40, 1  ;;  %v1211_v61 = vld [vmem:[%s1806_s23 + $0x130] sm:$0xff] }
 0x275   : > { %v625_v54 = vsel %vm328_vm1, %v624_v27, %v623_v50  ;;  %v640_v55 = vsel %vm328_vm1, %v639_v24, %v638_v51  ;;  %v669_v0 = vsel %vm328_vm1, %v668_v46, %v667_v59  ;;  %v1208_v51 = vld [vmem:[%s1806_s23 + $0x118] sm:$0xff]  ;;  %v1195_v59 = vld [vmem:[%s1806_s23 + $0xb0] sm:$0xff] }
 0x276   : > { %v627_v1 = vsel %vm331_vm2, %v626_v53, %v625_v54  ;;  %v642_v3 = vsel %vm331_vm2, %v641_v58, %v640_v55  ;;  %v1500_v52 = vpack.c.bf16 %v1208_v51, %v1207_v49  ;;  %v1193_v53 = vld [vmem:[%s1806_s23 + $0xa0] sm:$0xff]  ;;  %v1194_v54 = vld [vmem:[%s1806_s23 + $0xa8] sm:$0xff]  ;;  %v721_v51 = vld [vmem:[%s1806_s23 + $0x10] sm:$0xff] }
 0x277   : > { %v1209_v55 = vld [vmem:[%s1806_s23 + $0x120] sm:$0xff] }
 0x278   : > { %1501 = vmatpush3.bf16.msra.mxu0 %v1500_v52  ;;  %v722_v52 = vld [vmem:[%s1806_s23 + $0x18] sm:$0xff] }
 0x279   : > { %1502 = vmatprep.subr.bf16.mxu0 %v1590_v25 }
 0x27b   : > { %v1572_v20 = vpop.eup %1571 }
 0x27c   : > { %v593_v21 = vmul.f32 %v1572_v20, %v589_v19  ;;  %v592_v22 = vmul.f32 %v1572_v20, %v588_v18  ;;  %v670_v19 = vsel %vm331_vm2, %v621_v40, %v669_v0  ;;  %v1197_v0 = vld [vmem:[%s1806_s23 + $0xc0] sm:$0xff] }
 0x27e   : > { %v1790_v29 = vand.u32 2147483647, %v593_v21  ;;  %v1792_v31 = vand.u32 2147483647, %v592_v22  ;;  %v686_v21 = vsel %vm328_vm1, %v685_v62, %v684_v11  ;;  %v1458_v62 = vpack.c.bf16 %v1196_v60, %v1195_v59  ;;  %v1216_v11 = vld [vmem:[%s1806_s23 + $0x158] sm:$0xff]  ;;  %v723_v59 = vld [vmem:[%s1806_s23 + $0x20] sm:$0xff] }
 0x27f   : > { %v688_v37 = vsel %vm331_vm2, %v687_v35, %v686_v21  ;;  %v1204_v21 = vld [vmem:[%s1806_s23 + $0xf8] sm:$0xff]  ;;  %v724_v60 = vld [vmem:[%s1806_s23 + $0x28] sm:$0xff] }
 0x280   : > { %602 = vrot.lane.b32.xlu1 %v1790_v29, %s1585_s9  ;;  %600 = vrot.lane.b32.xlu0 %v1792_v31, %s1585_s9  ;;  %v656_v15 = vmul.f32 %v653_v10, %v1790_v29  ;;  %v655_v16 = vmul.f32 %v653_v10, %v1792_v31 }
 0x284   : > { %633 = vrot.lane.b32.xlu1 %v1790_v29, %s1586_s10  ;;  %631 = vrot.lane.b32.xlu0 %v1792_v31, %s1586_s10 }
 0x288   : > { %661 = vrot.lane.b32.xlu1 %v1790_v29, %s1587_s11  ;;  %659 = vrot.lane.b32.xlu0 %v1792_v31, %s1587_s11 }
 0x28c   : > { %678 = vrot.lane.b32.xlu1 %v1790_v29, %s1588_s12  ;;  %676 = vrot.lane.b32.xlu0 %v1792_v31, %s1588_s12 }
 0x2f2   : > { %v603_v47 = vpop.permute.xlu1 %602  ;;  %v601_v26 = vpop.permute.xlu0 %600 }
 0x2f3   : > { %v605_v56 = vsel %vm420_vm5, %v603_v47, 0.0  ;;  %v604_v57 = vsel %vm420_vm5, %v601_v26, 0.0  ;;  %v1191_v26 = vld [vmem:[%s1806_s23 + $0x90] sm:$0xff] }
 0x2f4   : > { %v630_v6 = vmul.f32 %v627_v1, %v605_v56  ;;  %v629_v7 = vmul.f32 %v627_v1, %v604_v57  ;;  %v1452_v50 = vpack.c.bf16 %v1192_v48, %v1191_v26  ;;  %v1455_v56 = vpack.c.bf16 %v1194_v54, %v1193_v53  ;;  %v1210_v57 = vld [vmem:[%s1806_s23 + $0x128] sm:$0xff]  ;;  %v1223_v53 = vld [vmem:[%s1806_s23 + $0x190] sm:$0xff]  ;;  %v1224_v54 = vld [vmem:[%s1806_s23 + $0x198] sm:$0xff] }
 0x2f5   : > { %v1503_v58 = vpack.c.bf16 %v1210_v57, %v1209_v55  ;;  %v1198_v1 = vld [vmem:[%s1806_s23 + $0xc8] sm:$0xff]  ;;  %v1476_v57 = vpack.c.bf16 %v722_v52, %v721_v51 }
 0x2f6   : > { %v634_v63 = vpop.permute.xlu1 %633  ;;  %v632_v28 = vpop.permute.xlu0 %631  ;;  %1453 = vmatpush3.bf16.msra.mxu1 %v1452_v50 }
 0x2f7   : > { %v636_v2 = vsel %vm421_vm6, %v634_v63, 0.0  ;;  %v635_v4 = vsel %vm421_vm6, %v632_v28, 0.0  ;;  %1454 = vmatprep.subr.bf16.mxu1 %v1590_v25  ;;  %1504 = vmatpush3.bf16.msra.mxu0 %v1503_v58  ;;  %v1212_v63 = vld [vmem:[%s1806_s23 + $0x138] sm:$0xff]  ;;  %v1524_v58 = vpack.c.bf16 %v1224_v54, %v1223_v53 }
 0x2f8   : > { %v645_v8 = vmul.f32 %v642_v3, %v636_v2  ;;  %v644_v9 = vmul.f32 %v642_v3, %v635_v4  ;;  %1505 = vmatprep.subr.bf16.mxu0 %v1590_v25  ;;  %v1506_v28 = vpack.c.bf16 %v1212_v63, %v1211_v61  ;;  %v1213_v2 = vld [vmem:[%s1806_s23 + $0x140] sm:$0xff]  ;;  %v1461_v3 = vpack.c.bf16 %v1198_v1, %v1197_v0  ;;  %v1214_v4 = vld [vmem:[%s1806_s23 + $0x148] sm:$0xff]  ;;  %v725_v0 = vld [vmem:[%s1806_s23 + $0x30] sm:$0xff] }
 0x2f9   : > { %v1225_v61 = vld [vmem:[%s1806_s23 + $0x1a0] sm:$0xff]  ;;  %v1479_v63 = vpack.c.bf16 %v724_v60, %v723_v59  ;;  %v726_v1 = vld [vmem:[%s1806_s23 + $0x38] sm:$0xff] }
 0x2fa   : > { %v647_v12 = vadd.f32 %v645_v8, %v630_v6  ;;  %v646_v13 = vadd.f32 %v644_v9, %v629_v7  ;;  %v662_v14 = vpop.permute.xlu1 %661  ;;  %v660_v17 = vpop.permute.xlu0 %659  ;;  %1456 = vmatpush3.bf16.msra.mxu1 %v1455_v56  ;;  %v1509_v6 = vpack.c.bf16 %v1214_v4, %v1213_v2  ;;  %v1199_v7 = vld [vmem:[%s1806_s23 + $0xd0] sm:$0xff]  ;;  %v1200_v8 = vld [vmem:[%s1806_s23 + $0xd8] sm:$0xff]  ;;  %v1482_v4 = vpack.c.bf16 %v726_v1, %v725_v0 }
 0x2fb   : > { %v664_v18 = vsel %vm422_vm7, %v662_v14, 0.0  ;;  %v663_v20 = vsel %vm422_vm7, %v660_v17, 0.0  ;;  %1457 = vmatprep.subr.bf16.mxu1 %v1590_v25  ;;  %1507 = vmatpush3.bf16.msra.mxu0 %v1506_v28  ;;  %v1215_v9 = vld [vmem:[%s1806_s23 + $0x150] sm:$0xff]  ;;  %v1464_v10 = vpack.c.bf16 %v1200_v8, %v1199_v7  ;;  %v1592_v17 = vmov 0.0   ;;  %v727_v7 = vld [vmem:[%s1806_s23 + $0x40] sm:$0xff]  ;;  %v728_v8 = vld [vmem:[%s1806_s23 + $0x48] sm:$0xff] }
 0x2fc   : > { %v658_v22 = vadd.f32 %v656_v15, %v647_v12  ;;  %v673_v32 = vmul.f32 %v670_v19, %v664_v18  ;;  %v657_v33 = vadd.f32 %v655_v16, %v646_v13  ;;  %v672_v34 = vmul.f32 %v670_v19, %v663_v20  ;;  %1508 = vmatprep.subr.bf16.mxu0 %v1590_v25  ;;  %v1201_v12 = vld [vmem:[%s1806_s23 + $0xe0] sm:$0xff]  ;;  %v1202_v13 = vld [vmem:[%s1806_s23 + $0xe8] sm:$0xff]  ;;  %v1203_v20 = vld [vmem:[%s1806_s23 + $0xf0] sm:$0xff] }
 0x2fd   : > { %v1512_v14 = vpack.c.bf16 %v1216_v11, %v1215_v9  ;;  %v1217_v15 = vld [vmem:[%s1806_s23 + $0x160] sm:$0xff]  ;;  %v1218_v16 = vld [vmem:[%s1806_s23 + $0x168] sm:$0xff]  ;;  %1340 = vmatprep.mubr.msk.f32.mxu1 %vm1591_vm10, %v1592_v17  ;;  %1410 = vmatprep.mubr.msk.f32.mxu0 %vm1591_vm10, %v1592_v17  ;;  %v1467_v18 = vpack.c.bf16 %v1202_v13, %v1201_v12  ;;  %v1227_v2 = vld [vmem:[%s1806_s23 + $0x1b0] sm:$0xff]  ;;  %v1485_v11 = vpack.c.bf16 %v728_v8, %v727_v7 }
 0x2fe   : > { %v679_v36 = vpop.permute.xlu1 %678  ;;  %v677_v29 = vpop.permute.xlu0 %676  ;;  %v675_v39 = vadd.f32 %v673_v32, %v658_v22  ;;  %v674_v5 = vadd.f32 %v672_v34, %v657_v33  ;;  %1459 = vmatpush3.bf16.msra.mxu1 %v1458_v62  ;;  %v1515_v19 = vpack.c.bf16 %v1218_v16, %v1217_v15  ;;  %v1219_v22 = vld [vmem:[%s1806_s23 + $0x170] sm:$0xff]  ;;  %v1220_v32 = vld [vmem:[%s1806_s23 + $0x178] sm:$0xff]  ;;  %v1470_v33 = vpack.c.bf16 %v1204_v21, %v1203_v20  ;;  %v1226_v62 = vld [vmem:[%s1806_s23 + $0x1a8] sm:$0xff] }
 0x2ff   : > { %v681_v31 = vsel %vm423_vm8, %v679_v36, 0.0  ;;  %v680_v38 = vsel %vm423_vm8, %v677_v29, 0.0  ;;  %1460 = vmatprep.subr.bf16.mxu1 %v1590_v25  ;;  %1510 = vmatpush3.bf16.msra.mxu0 %v1509_v6  ;;  %v1518_v34 = vpack.c.bf16 %v1220_v32, %v1219_v22  ;;  %v1527_v28 = vpack.c.bf16 %v1226_v62, %v1225_v61  ;;  %v1229_v9 = vld [vmem:[%s1806_s23 + $0x1c0] sm:$0xff]  ;;  %v729_v13 = vld [vmem:[%s1806_s23 + $0x50] sm:$0xff]  ;;  %v1232_v16 = vld [vmem:[%s1806_s23 + $0x1d8] sm:$0xff] }
 0x300   : > { %v691_v41 = vmul.f32 %v688_v37, %v681_v31  ;;  %v690_v42 = vmul.f32 %v688_v37, %v680_v38  ;;  %1511 = vmatprep.subr.bf16.mxu0 %v1590_v25  ;;  %v1231_v15 = vld [vmem:[%s1806_s23 + $0x1d0] sm:$0xff]  ;;  %v732_v20 = vld [vmem:[%s1806_s23 + $0x68] sm:$0xff]  ;;  %v1233_v21 = vld [vmem:[%s1806_s23 + $0x1e0] sm:$0xff] }
 0x301   : > { %v1234_v22 = vld [vmem:[%s1806_s23 + $0x1e8] sm:$0xff] }
 0x302   : > { %v1857_v43 = vadd.f32 %v691_v41, %v675_v39  ;;  %v1859_v40 = vadd.f32 %v690_v42, %v674_v5  ;;  %1462 = vmatpush3.bf16.msra.mxu1 %v1461_v3  ;;  %v1228_v3 = vld [vmem:[%s1806_s23 + $0x1b8] sm:$0xff] }
 0x303   : > { %1463 = vmatprep.subr.bf16.mxu1 %v1590_v25  ;;  %1513 = vmatpush3.bf16.msra.mxu0 %v1512_v14  ;;  %v1530_v6 = vpack.c.bf16 %v1228_v3, %v1227_v2  ;;  %v730_v14 = vld [vmem:[%s1806_s23 + $0x58] sm:$0xff] }
 0x304   : > { %v694_v27 = vsel %vm393_vm3, %v1859_v40, 0.0  ;;  %v695_v24 = vsel %vm393_vm3, %v1857_v43, 0.0  ;;  %v699_v30 = vmul.f32 %v1859_v40, %v1859_v40  ;;  %v700_v23 = vmul.f32 %v1857_v43, %v1857_v43  ;;  %1514 = vmatprep.subr.bf16.mxu0 %v1590_v25 }
 0x305   : > { %v696_v44 = vadd.f32 %v695_v24, %v694_v27 }
 0x306   : > { %v701_v45 = vsel %vm393_vm3, %v699_v30, 0.0  ;;  %v702_v46 = vsel %vm393_vm3, %v700_v23, 0.0  ;;  %1465 = vmatpush3.bf16.msra.mxu1 %v1464_v10  ;;  %v719_v23 = vld [vmem:[%s1806_s23] sm:$0xff]  ;;  %v1230_v10 = vld [vmem:[%s1806_s23 + $0x1c8] sm:$0xff] }
 0x307   : > { %697 = vadd.xlane.f32.xlu0 %v696_v44  ;;  %v703_v47 = vadd.f32 %v702_v46, %v701_v45  ;;  %1466 = vmatprep.subr.bf16.mxu1 %v1590_v25  ;;  %v720_v44 = vld [vmem:[%s1806_s23 + $0x8] sm:$0xff]  ;;  %v1221_v45 = vld [vmem:[%s1806_s23 + $0x180] sm:$0xff]  ;;  %v1533_v12 = vpack.c.bf16 %v1230_v10, %v1229_v9 }
 0x308   : > { %1516 = vmatpush3.bf16.msra.mxu0 %v1515_v19  ;;  %v1222_v46 = vld [vmem:[%s1806_s23 + $0x188] sm:$0xff]  ;;  %v1473_v48 = vpack.c.bf16 %v720_v44, %v719_v23  ;;  %v731_v19 = vld [vmem:[%s1806_s23 + $0x60] sm:$0xff] }
 0x309   : > { %704 = vadd.xlane.f32.xlu1 %v703_v47  ;;  %1517 = vmatprep.subr.bf16.mxu0 %v1590_v25  ;;  %v1521_v50 = vpack.c.bf16 %v1222_v46, %v1221_v45  ;;  %v1491_v32 = vpack.c.bf16 %v732_v20, %v731_v19 }
 0x30a   : > { %1468 = vmatpush3.bf16.msra.mxu1 %v1467_v18  ;;  %v1536_v18 = vpack.c.bf16 %v1232_v16, %v1231_v15 }
 0x30b   : > { %1469 = vmatprep.subr.bf16.mxu1 %v1590_v25 }
 0x30c   : > { %1519 = vmatpush3.bf16.msra.mxu0 %v1518_v34  ;;  %v733_v34 = vld [vmem:[%s1806_s23 + $0x70] sm:$0xff] }
 0x30d   : > { %1520 = vmatprep.subr.bf16.mxu0 %v1590_v25 }
 0x30e   : > { %1471 = vmatpush3.bf16.msra.mxu1 %v1470_v33  ;;  %v1539_v33 = vpack.c.bf16 %v1234_v22, %v1233_v21 }
 0x30f   : > { %1472 = vmatprep.subr.bf16.mxu1 %v1590_v25 }
 0x394   : > { %v698_v35 = vpop.xlane.xlu0 %697 }
 0x395   : > { %v706_v36 = vmul.f32 0.00390625, %v698_v35  ;;  %v734_v35 = vld [vmem:[%s1806_s23 + $0x78] sm:$0xff] }
 0x396   : > { %v705_v29 = vpop.xlane.xlu1 %704 }
 0x397   : > { %v707_v31 = vmul.f32 0.00390625, %v705_v29  ;;  %v708_v37 = vmul.f32 %v706_v36, %v706_v36  ;;  %v711_v41 = vsub.f32 %v1859_v40, %v706_v36  ;;  %v712_v42 = vsub.f32 %v1857_v43, %v706_v36  ;;  %v1235_v36 = vld [vmem:[%s1806_s23 + $0x1f0] sm:$0xff]  ;;  %v1236_v29 = vld [vmem:[%s1806_s23 + $0x1f8] sm:$0xff] }
 0x399   : > { %v709_v38 = vsub.f32 %v707_v31, %v708_v37  ;;  %v1494_v31 = vpack.c.bf16 %v734_v35, %v733_v34  ;;  %v1542_v37 = vpack.c.bf16 %v1236_v29, %v1235_v36 }
 0x39b   : > { %v710_v39 = vmax.f32 %v709_v38, 0.0 }
 0x39d   : > { %v713_v5 = vadd.f32 1e-05, %v710_v39 }
 0x39f   : > { %1573 = vrsqrt.f32 %v713_v5 }
 0x3a9   : > { %v1574_v27 = vpop.eup %1573 }
 0x3aa   : > { %v715_v24 = vmul.f32 %v1574_v27, %v711_v41  ;;  %v716_v30 = vmul.f32 %v1574_v27, %v712_v42 }
 0x3ac   : > { %v1923_v47 = vmax.f32 %v715_v24, 0.0  ;;  %v1925_v26 = vmax.f32 %v716_v30, 0.0 }
 0x3ae   : > { %v754_v40 = vrot.slane %v1923_v47, 1  ;;  %v917_v43 = vrot.slane %v1923_v47, 2  ;;  %v918_v49 = vrot.slane %v1925_v26, 1  ;;  %v827_v38 = vrot.slane %v1925_v26, 7 }
 0x3af   : > { %v1009_v39 = vrot.slane %v1923_v47, 3  ;;  %v1010_v5 = vrot.slane %v1925_v26, 2 }
 0x3b0   : > { %v755_v55 = vsel %vm325_vm0, %v1925_v26, %v754_v40  ;;  %v919_v56 = vsel %vm325_vm0, %v918_v49, %v917_v43  ;;  %v828_v41 = vsel %vm325_vm0, %v827_v38, %v1923_v47 }
 0x3b1   : > { %1341 = vmatmul.mubr.f32.vlgmr.msra.gmra.mrb[0].mxu1 %v755_v55  ;;  %1411 = vmatmul.mubr.f32.vlgmr.msra.gmra.mrb[0].mxu0 %v919_v56  ;;  %v1011_v42 = vsel %vm325_vm0, %v1010_v5, %v1009_v39 }
 0x3b2   : > { %1474 = vmatpush3.bf16.msra.mxu1 %v1473_v48  ;;  %1522 = vmatpush3.bf16.msra.mxu0 %v1521_v50 }
 0x3b3   : > { %1475 = vmatprep.subr.bf16.mxu1 %v1590_v25  ;;  %1523 = vmatprep.subr.bf16.mxu0 %v1590_v25 }
 0x3b4   : > { %1375 = vmatprep.mubr.msk.f32.mxu1 %vm1591_vm10, %v1592_v17  ;;  %1445 = vmatprep.mubr.msk.f32.mxu0 %vm1591_vm10, %v1592_v17  ;;  %v1488_v17 = vpack.c.bf16 %v730_v14, %v729_v13 }
 0x3b6   : > { %1477 = vmatpush3.bf16.msra.mxu1 %v1476_v57  ;;  %1525 = vmatpush3.bf16.msra.mxu0 %v1524_v58 }
 0x3b7   : > { %1478 = vmatprep.subr.bf16.mxu1 %v1590_v25  ;;  %1526 = vmatprep.subr.bf16.mxu0 %v1590_v25 }
 0x3ba   : > { %1480 = vmatpush3.bf16.msra.mxu1 %v1479_v63  ;;  %1528 = vmatpush3.bf16.msra.mxu0 %v1527_v28 }
 0x3bb   : > { %1481 = vmatprep.subr.bf16.mxu1 %v1590_v25  ;;  %1529 = vmatprep.subr.bf16.mxu0 %v1590_v25 }
 0x3be   : > { %1483 = vmatpush3.bf16.msra.mxu1 %v1482_v4  ;;  %1531 = vmatpush3.bf16.msra.mxu0 %v1530_v6 }
 0x3bf   : > { %1484 = vmatprep.subr.bf16.mxu1 %v1590_v25  ;;  %1532 = vmatprep.subr.bf16.mxu0 %v1590_v25 }
 0x3c2   : > { %1486 = vmatpush3.bf16.msra.mxu1 %v1485_v11  ;;  %1534 = vmatpush3.bf16.msra.mxu0 %v1533_v12 }
 0x3c3   : > { %1487 = vmatprep.subr.bf16.mxu1 %v1590_v25  ;;  %1535 = vmatprep.subr.bf16.mxu0 %v1590_v25 }
 0x3c6   : > { %1489 = vmatpush3.bf16.msra.mxu1 %v1488_v17  ;;  %1537 = vmatpush3.bf16.msra.mxu0 %v1536_v18 }
 0x3c7   : > { %1490 = vmatprep.subr.bf16.mxu1 %v1590_v25  ;;  %1538 = vmatprep.subr.bf16.mxu0 %v1590_v25 }
 0x3ca   : > { %1492 = vmatpush3.bf16.msra.mxu1 %v1491_v32  ;;  %1540 = vmatpush3.bf16.msra.mxu0 %v1539_v33 }
 0x3cb   : > { %1493 = vmatprep.subr.bf16.mxu1 %v1590_v25  ;;  %1541 = vmatprep.subr.bf16.mxu0 %v1590_v25 }
 0x3ce   : > { %1495 = vmatpush3.bf16.msra.mxu1 %v1494_v31  ;;  %1543 = vmatpush3.bf16.msra.mxu0 %v1542_v37 }
 0x3d1   : > { %1376 = vmatmul.mubr.f32.vlgmr.msra.gmra.mrb[0].mxu1 %v828_v41  ;;  %1446 = vmatmul.mubr.f32.vlgmr.msra.gmra.mrb[0].mxu0 %v1011_v42 }
 0x4a4   : > { %v896_v27 = vpop.f32.mrb[0].mxu1  ;;  %v1079_v25 = vpop.f32.mrb[0].mxu0 }
 0x4a5   : > { %v1544_v24 = vadd.f32 %v1079_v25, %v896_v27  ;;  %v1377_v30 = vpop.f32.mrb[1].mxu1  ;;  %v1447_v23 = vpop.f32.mrb[1].mxu0 }
 0x4a7   : > { %1084 = vst [vmem:[%s293_s26] sm:$0x3] %v1544_v24 }
 0x4a8 PF: > { %s15_s18 = sadd.s32 1, %s1581_s18  }
 0x4a9   : > { %p12_p5 = scmp.ge.s32.totalorder %s15_s18, 4  }
 0x4ab   :  { %14 = sbr.rel (!%p12_p5) target bundleno = 1 (0x1), region = 82 }

</bundles_post_ra>
